<compile_context>
chip_gen: v6e
topology: v6e:2x2x1
jax: 0.10.0
libtpu: 0.0.40
codegen_flags: <defaults>
</compile_context>

<pallas_src>
import math

import jax
import jax.numpy as jnp
from jax.experimental import pallas as pl
from jax.experimental.pallas import tpu as pltpu

_LANES = 128
_MIN_PALLAS_ELEMS = 128 * 1024  # below this a single XLA fusion is faster


def _num_tensorcores():
    """2 TensorCores per chip on v7x; 1 on v5e/v6e."""
    # TODO(synk): if xprof shows the "parallel" leading axis not actually
    # sharding across the two v7x TensorCores, switch it to pltpu.CORE_PARALLEL
    # (or a pl.core_map split).
    try:
        kind = (jax.devices()[0].device_kind or "").lower()
        if "v7" in kind:
            return 2
    except Exception:
        pass
    return 1


def _wloss_partial_kernel(w_ref, x_ref, out_ref, acc_ref):
    # w_ref:   VMEM f32[tb, 128]     resident +/-1 column weight (same for every tile
    #                                because tb*128 % C == 0); fetched once.
    # x_ref:   VMEM dtype[tb, 128]   lane-dense slab tile of pred (native dtype).
    # out_ref: VMEM f32[1, 8, 128]   per-core partial of sum(pred * w).
    # acc_ref: VMEM f32[tb, 128]     running *unweighted* accumulator.
    b = pl.program_id(1)            # row-tile index ("arbitrary" / reduction axis)
    nb = pl.num_programs(1)

    @pl.when(b == 0)
    def _init():
        acc_ref[...] = jnp.zeros_like(acc_ref)

    # Hot loop: one add (+ one widening cast for sub-32-bit inputs) per vreg.
    acc_ref[...] += x_ref[...].astype(jnp.float32)

    @pl.when(b == nb - 1)
    def _finalize():
        combined = jnp.sum(acc_ref[...] * w_ref[...])
        out_ref[...] = jnp.broadcast_to(combined, out_ref.shape)


def _combined_small(pred, i):
    """sum(pred * w) via a single fused XLA reduction (small / ragged inputs)."""
    C = pred.shape[1]
    w = jnp.where(jnp.arange(C, dtype=jnp.int32) == i, -1.0, 1.0).astype(jnp.float32)
    return jnp.sum(pred.astype(jnp.float32) * w[None, :])


def _combined_tail(x_tail, start_row, C, i):
    """sum(x_tail * w) for the row remainder of the lane-dense (rows, 128) view."""
    r, L = x_tail.shape
    # Column of flat element (start_row + rr)*L + l, computed mod C to stay in int32.
    row_mod = (start_row % C + jnp.arange(r, dtype=jnp.int32)) % C
    col = (row_mod[:, None] * L + jnp.arange(L, dtype=jnp.int32)[None, :]) % C
    w = jnp.where(col == i, -1.0, 1.0).astype(jnp.float32)
    return jnp.sum(x_tail.astype(jnp.float32) * w)


def wasserstein_loss(pred, i, scaling=None, *, d_train, block_rows=1024,
                     nsplit=None, min_elems=_MIN_PALLAS_ELEMS):
    """Pallas implementation of WassersteinLoss(d_train).forward(pred, i, scaling).

    pred: (B, C) array (f32 or bf16).  i: column index.  scaling: optional scalar.
    Returns a float32 scalar equal to torch.mean of the sign-flipped prediction.
    """
    if scaling is not None and jnp.ndim(scaling) != 0:
        # TODO(synk): torch allows any broadcastable `scaling` tensor; only the
        # scalar case is supported by this kernel.
        raise NotImplementedError("only scalar `scaling` is supported")

    B, C = pred.shape
    n = B * C
    i = i % C  # normalize negative / traced indices

    use_pallas = (n >= min_elems) and (n % _LANES == 0)
    tb = 0
    if use_pallas:
        rows = n // _LANES
        nsp = int(nsplit) if nsplit is not None else _num_tensorcores()
        nsp = max(1, nsp)
        # Sublane granularity for the block's second-to-minor dim (f32: 8, bf16: 16).
        sub = 8 * max(1, 4 // pred.dtype.itemsize)
        # tb*128 must be a multiple of C so a single weight tile serves every block.
        d = C // math.gcd(C, _LANES)
        m = sub * d // math.gcd(sub, d)
        tb_cap = min(int(block_rows), rows // nsp)
        tb = (tb_cap // m) * m
        if tb == 0:
            # TODO(synk): pathological C (column period larger than the tile) and
            # B*C % 128 != 0 fall back to a plain fused XLA reduction instead of a
            # 1-D-blocked Pallas path.
            use_pallas = False

    if use_pallas:
        nb = rows // (nsp * tb)
        covered_rows = nsp * nb * tb

        # Lane-dense view: row-major flatten + reshape is a free bitcast
        # (no padding copy -- n % 128 == 0 is guaranteed on this path).
        x2d = pred.reshape(rows, _LANES)

        # Resident +/-1 column-weight tile (applied once at finalize, not per tile).
        lidx = jnp.arange(tb * _LANES, dtype=jnp.int32)
        w = jnp.where(lidx % C == i, -1.0, 1.0).astype(jnp.float32).reshape(tb, _LANES)

        partial = pl.pallas_call(
            _wloss_partial_kernel,
            out_shape=jax.ShapeDtypeStruct((nsp, 8, _LANES), jnp.float32),
            grid_spec=pltpu.PrefetchScalarGridSpec(
                num_scalar_prefetch=0,
                grid=(nsp, nb),
                in_specs=[
                    # weight: constant block index -> fetched once, stays in VMEM
                    pl.BlockSpec((tb, _LANES), lambda c, b: (0, 0)),
                    # data: core c owns the contiguous row-block range [c*nb, (c+1)*nb)
                    pl.BlockSpec((tb, _LANES), lambda c, b: (c * nb + b, 0)),
                ],
                out_specs=pl.BlockSpec((1, 8, _LANES), lambda c, b: (c, 0, 0)),
                scratch_shapes=[pltpu.VMEM((tb, _LANES), jnp.float32)],
            ),
            compiler_params=pltpu.CompilerParams(
                dimension_semantics=("parallel", "arbitrary"),
            ),
        )(w, x2d)

        combined = jnp.sum(partial[:, 0, 0])
        if covered_rows < rows:
            # Row remainder: one fused slice + weighted reduce, reads only the tail.
            combined = combined + _combined_tail(x2d[covered_rows:], covered_rows, C, i)
    else:
        combined = _combined_small(pred, i)

    result = combined / n
    if scaling is not None:
        result = result * jnp.asarray(scaling, dtype=jnp.float32)
    if d_train:
        result = -result
    return result


def _reference(pred, i, scaling, d_train):
    """Direct transcription of the torch forward (on an f32 copy)."""
    p = pred.astype(jnp.float32)
    if scaling is not None:
        p = p * scaling
    if not d_train:
        p = p.at[:, i].multiply(-1.0)
    else:
        p = p * -1.0
        p = p.at[:, i].multiply(-1.0)
    return jnp.mean(p)


if __name__ == "__main__":
    ok = True

    def _check(got, want, atol, rtol):
        return bool(jnp.allclose(got, want, atol=atol, rtol=rtol))

    # 1) The module's real call shape: tiny (batch, critic-outputs) -> XLA fast path.
    pred = jax.random.normal(jax.random.PRNGKey(0), (4, 8), dtype=jnp.float32)
    for d_train in (True, False):
        for sc in (None, 0.5):
            got = jax.block_until_ready(wasserstein_loss(pred, 2, sc, d_train=d_train))
            ok &= _check(got, _reference(pred, 2, sc, d_train), 1e-5, 1e-5)

    # 2) Pallas path, power-of-two C, non-multiple row count -> fused jnp tail.
    pred2 = jax.random.normal(jax.random.PRNGKey(1), (528, 8), dtype=jnp.float32)
    for d_train in (True, False):
        got = jax.block_until_ready(
            wasserstein_loss(pred2, 5, 1.25, d_train=d_train, block_rows=8, min_elems=0))
        ok &= _check(got, _reference(pred2, 5, 1.25, d_train), 1e-5, 1e-4)

    # 3) Forced 2-way core split (exercises the per-core partial-sum combine).
    got = jax.block_until_ready(
        wasserstein_loss(pred2, 0, None, d_train=False, block_rows=8, nsplit=2, min_elems=0))
    ok &= _check(got, _reference(pred2, 0, None, False), 1e-5, 1e-4)

    # 4) General (non power-of-two) C: resident weight tile with tb*128 % C == 0.
    pred3 = jax.random.normal(jax.random.PRNGKey(2), (2048, 7), dtype=jnp.float32)
    got = jax.block_until_ready(
        wasserstein_loss(pred3, 3, 0.75, d_train=True, block_rows=64, min_elems=0))
    ok &= _check(got, _reference(pred3, 3, 0.75, True), 1e-5, 1e-4)

    # 5) bf16 input stays bf16 through the DMA; widened to f32 only at the accumulate.
    pred4 = jax.random.normal(jax.random.PRNGKey(3), (1024, 8), dtype=jnp.bfloat16)
    got = jax.block_until_ready(
        wasserstein_loss(pred4, 1, None, d_train=False, block_rows=16, min_elems=0))
    ok &= _check(got, _reference(pred4.astype(jnp.float32), 1, None, False), 1e-4, 1e-3)

    # 6) Default production configuration (block_rows=1024, auto core split,
    #    above the small-input threshold).
    pred5 = jax.random.normal(jax.random.PRNGKey(4), (16384, 8), dtype=jnp.float32)
    got = jax.block_until_ready(wasserstein_loss(pred5, 6, 2.0, d_train=True))
    ok &= _check(got, _reference(pred5, 6, 2.0, True), 1e-5, 1e-4)

    if ok:
        print("KERNEL_OK")
</pallas_src>

<mosaic_0001>
module attributes {stable_mosaic.version = 11 : i64} {
  func.func @_wloss_partial_kernel(%arg0: i32, %arg1: i32, %arg2: memref<8x128xf32, #tpu.memory_space<vmem>>, %arg3: memref<8x128xf32, #tpu.memory_space<vmem>>, %arg4: memref<1x8x128xf32, #tpu.memory_space<vmem>>, %arg5: memref<8x128xf32, #tpu.memory_space<vmem>>) attributes {dimension_semantics = [#tpu.dimension_semantics<parallel>, #tpu.dimension_semantics<arbitrary>], iteration_bounds = array<i64: 1, 4>, scalar_prefetch = 0 : i64, scratch_operands = 1 : i64, tpu.core_type = #tpu.core_type<tc>, window_params = [{pipeline_mode = #tpu.pipeline_mode<synchronous>, transform_indices = @transform_0, window_bounds = array<i64: 8, 128>}, {transform_indices = @transform_1, window_bounds = array<i64: 8, 128>}, {transform_indices = @transform_2, window_bounds = array<i64: 1, 8, 128>}]} {
    %c0_i32 = arith.constant 0 : i32
    %0 = arith.cmpi eq, %arg1, %c0_i32 : i32
    %1 = arith.extui %0 : i1 to i32
    %c0_i32_0 = arith.constant 0 : i32
    %2 = arith.cmpi ne, %1, %c0_i32_0 : i32
    scf.if %2 {
      %cst = arith.constant 0.000000e+00 : f32
      %10 = vector.broadcast %cst : f32 to vector<8x128xf32>
      %c0_7 = arith.constant 0 : index
      %c0_8 = arith.constant 0 : index
      %11 = vector.load %arg5[%c0_7, %c0_8] : memref<8x128xf32, #tpu.memory_space<vmem>>, vector<8x128xf32>
      tpu.vector_store %arg5[%c0_7, %c0_8], %10 {strides = array<i32>} : memref<8x128xf32, #tpu.memory_space<vmem>>, vector<8x128xf32>,
    } else {
    }
    %c0 = arith.constant 0 : index
    %c0_1 = arith.constant 0 : index
    %3 = vector.load %arg5[%c0, %c0_1] : memref<8x128xf32, #tpu.memory_space<vmem>>, vector<8x128xf32>
    %c0_2 = arith.constant 0 : index
    %c0_3 = arith.constant 0 : index
    %4 = vector.load %arg3[%c0_2, %c0_3] : memref<8x128xf32, #tpu.memory_space<vmem>>, vector<8x128xf32>
    %5 = arith.addf %3, %4 : vector<8x128xf32>
    %c0_4 = arith.constant 0 : index
    %c0_5 = arith.constant 0 : index
    %6 = vector.load %arg5[%c0_4, %c0_5] : memref<8x128xf32, #tpu.memory_space<vmem>>, vector<8x128xf32>
    tpu.vector_store %arg5[%c0_4, %c0_5], %5 {strides = array<i32>} : memref<8x128xf32, #tpu.memory_space<vmem>>, vector<8x128xf32>,
    %c3_i32 = arith.constant 3 : i32
    %7 = arith.cmpi eq, %arg1, %c3_i32 : i32
    %8 = arith.extui %7 : i1 to i32
    %c0_i32_6 = arith.constant 0 : i32
    %9 = arith.cmpi ne, %8, %c0_i32_6 : i32
    scf.if %9 {
      %c0_7 = arith.constant 0 : index
      %c0_8 = arith.constant 0 : index
      %10 = vector.load %arg5[%c0_7, %c0_8] : memref<8x128xf32, #tpu.memory_space<vmem>>, vector<8x128xf32>
      %c0_9 = arith.constant 0 : index
      %c0_10 = arith.constant 0 : index
      %11 = vector.load %arg2[%c0_9, %c0_10] : memref<8x128xf32, #tpu.memory_space<vmem>>, vector<8x128xf32>
      %12 = arith.mulf %10, %11 : vector<8x128xf32>
      %13 = vector.shape_cast %12 : vector<8x128xf32> to vector<1x8x128xf32>
      %cst = arith.constant dense<0.000000e+00> : vector<1xf32>
      %14 = vector.multi_reduction <add>, %13, %cst [1, 2] : vector<1x8x128xf32> to vector<1xf32>
      %15 = vector.shape_cast %14 : vector<1xf32> to vector<1x1x1xf32>
      %16 = vector.extract %15[0, 0, 0] : f32 from vector<1x1x1xf32>
      %17 = vector.broadcast %16 : f32 to vector<1x8x128xf32>
      %c0_11 = arith.constant 0 : index
      %c0_12 = arith.constant 0 : index
      %c0_13 = arith.constant 0 : index
      %18 = vector.load %arg4[%c0_11, %c0_12, %c0_13] : memref<1x8x128xf32, #tpu.memory_space<vmem>>, vector<1x8x128xf32>
      tpu.vector_store %arg4[%c0_11, %c0_12, %c0_13], %17 {strides = array<i32>} : memref<1x8x128xf32, #tpu.memory_space<vmem>>, vector<1x8x128xf32>,
    } else {
    }
    return
  }
  func.func @transform_0(%arg0: i32, %arg1: i32) -> (i32, i32) {
    %c0_i32 = arith.constant 0 : i32
    %c0_i32_0 = arith.constant 0 : i32
    %c0_i32_1 = arith.constant 0 : i32
    return %c0_i32, %c0_i32_0 : i32, i32
  }
  func.func @transform_1(%arg0: i32, %arg1: i32) -> (i32, i32) {
    %c4_i32 = arith.constant 4 : i32
    %0 = arith.muli %arg0, %c4_i32 : i32
    %1 = arith.addi %0, %arg1 : i32
    %c0_i32 = arith.constant 0 : i32
    %c0_i32_0 = arith.constant 0 : i32
    return %1, %c0_i32 : i32, i32
  }
  func.func @transform_2(%arg0: i32, %arg1: i32) -> (i32, i32, i32) {
    %c0_i32 = arith.constant 0 : i32
    %c0_i32_0 = arith.constant 0 : i32
    %c0_i32_1 = arith.constant 0 : i32
    return %arg0, %c0_i32, %c0_i32_0 : i32, i32, i32
  }
}

</mosaic_0001>

<bundles_post_ra>
// kernel: tpu_custom_call.1
= control target key start
LH: loop header
LB: loop body
LE: loop exit
PB: predicated region body
PF: predicated region fallthrough
CT: control target
= control target key end

     0   :  { %7 = vsyncpa [#allocation4], 0  ;;  %s681_s0 = inlined_call_operand.hbm [shape: f32[8,128], index: 0, kind: input, shape index: {}]   ;;  %s682_s1 = inlined_call_operand.hbm [shape: f32[33,128], index: 1, kind: input, shape index: {}]   ;;  %s683_s2 = inlined_call_operand.hbm [shape: f32[1,8,128], index: 2, kind: output, shape index: {}]  }
   0x1   :  { %8 = vsyncpa [#allocation7], 0 }
   0x2   :  { %10 = vsyncpa [#allocation7 + $0x1], 0 }
   0x3   :  { %11 = vsyncpa [#allocation5], 0  ;;  %s544_s9 = smov 0   ;;  %s546_s10 = smov 0  }
   0x4   :  { %s548_s11 = smov 0   ;;  %s550_s12 = smov 0  }
   0x5   :  { %s552_s13 = smov 0   ;;  %s554_s14 = smov 0  }
   0x6 LB: > { %s296_s15 = sadd.s32 4294967295, %s523_s14   ;;  %p74_p0 = scmp.ne.s32.totalorder %s507_s10, %s503_s9  ;;  %s523_s14 = sphi %s554_s14, %s17_s14   ;;  %s519_s13 = sphi %s552_s13, %s694_s13   ;;  %s515_s12 = sphi %s550_s12, %s693_s12   ;;  %s511_s11 = sphi %s548_s11, %s692_s11   ;;  %s507_s10 = sphi %s546_s10, %s691_s10   ;;  %s503_s9 = sphi %s544_s9, %s690_s9  }
   0x7   : > { %p576_p1 = scmp.eq.s32.totalorder %s296_s15, 0  ;;  %p297_p2 = scmp.ge.s32.totalorder %s523_s14, 1 }
   0x8   : > { %p111_p3 = scmp.lt.s32.totalorder %s523_s14, 5  ;;  %s525_s19 = smov [#allocation3]  }
   0x9   : > { %p584_p4 = por %p576_p1, %p74_p0  ;;  %s124_s20 = sshll.u32 %s525_s19, 4  ;;  %s125_s20 = int_to_ptr.vmem [resolvable:$true] %s124_s20 }
   0xa   : > { %p588_p5 = pnand %p297_p2, %p111_p3  ;;  %s26_s22 = sadd.s32 1, %s519_s13 }
   0xb   : > { %s61_s23 = sadd.s32 1, %s511_s11  ;;  %p27_p8 = scmp.ge.s32.totalorder %s26_s22, 4 }
   0xc   : > { %p323_p6 = pneg %p588_p5  ;;  %s398_s24 = scalar_lea.vmem %s125_s20, 128 }
   0xd   : > { %p399_p10 = scmp.ne.s32.totalorder %s125_s20, %s398_s24  ;;  %p406_p13 = scmp.lt.s32.totalorder %s125_s20, %s125_s20 }
   0xe   : > { %p596_p7 = pnand %p323_p6, %p576_p1  ;;  %p407_p0 = scmp.lt.s32.totalorder %s398_s24, %s398_s24 }
  0x10   : > { %p389_p9 = pneg %p596_p7  ;;  %p408_p2 = por %p407_p0, %p406_p13 }
  0x12   : > { %p401_p11 = pnand %p399_p10, %p389_p9 }
  0x14   : > { %p402_p12 = pneg %p401_p11 }
  0x16   : > { %p409_p3 = pnand %p408_p2, %p402_p12 }
  0x18   : > { %412 = shalt.err (!%p409_p3)
}
  0x19   : > { %326 = dma.hbm_to_vmem [thread:$0]  (!%p596_p7), %s681_s0, 128, %s125_s20, [#allocation4]  }
  0x1a   : > { %s696_s22 = smov (%p27_p8, %s26_s22), 0  ;;  %p68_p6 = scmp.ne.s32.totalorder %s511_s11, %s507_s10 }
  0x1b   : > { %p69_p9 = scmp.eq.s32.totalorder %s523_s14, 0  ;;  %s58_s27 = ssub.s32 %s519_s13, %s696_s22 }
  0x1c   : > { %p332_p10 = scmp.lt.s32.totalorder %s523_s14, 4  ;;  %p59_p11 = scmp.eq.s32.totalorder %s58_s27, 0 }
  0x1d   : > { %p70_p12 = por %p69_p9, %p68_p6  ;;  %s135_s28 = sand.u32 1, %s511_s11  }
  0x1e   : > { %s301_s29 = sshll.u32 %s519_s13, 7  ;;  %s300_s3 = sshll.u32 %s135_s28, 3 }
  0x1f   : > { %s620_s30 = scalar_select %p59_p11, %s511_s11, %s61_s23  }
  0x20   : > { %s146_s6 = scalar_lea.hbm %s682_s1, %s301_s29  ;;  %s139_s7 = scalar_lea.vmem [#allocation6], %s300_s3 }
  0x21   : > { %s148_s8 = sshll.u32 %s139_s7, 4  ;;  %p625_p7 = pnand %p332_p10, %p70_p12  ;;  %s149_s8 = int_to_ptr.vmem [resolvable:$true] %s148_s8 }
  0x22   : > { %s136_s19 = scalar_lea.sflag [#allocation7], %s135_s28  ;;  %s426_s20 = scalar_lea.vmem %s149_s8, 128 }
  0x23   : > { %p415_p8 = pneg %p625_p7  ;;  %p427_p13 = scmp.ne.s32.totalorder %s149_s8, %s426_s20 }
  0x24   : > { %s526_s21 = smov [#allocation6]  }
  0x25   : > { %p429_p0 = pnand %p427_p13, %p415_p8  ;;  %s431_s23 = sshll.u32 %s526_s21, 4  ;;  %s432_s23 = int_to_ptr.vmem [resolvable:$false] %s431_s23 }
  0x26   : > { %s433_s24 = scalar_lea.vmem %s432_s23, 256  ;;  %p434_p3 = scmp.lt.s32.totalorder %s149_s8, %s432_s23 }
  0x27   : > { %p430_p2 = pneg %p429_p0  ;;  %p435_p6 = scmp.lt.s32.totalorder %s433_s24, %s426_s20 }
  0x29   : > { %p436_p9 = por %p435_p6, %p434_p3 }
  0x2b   : > { %p437_p10 = pnand %p436_p9, %p430_p2 }
  0x2d   : > { %440 = shalt.err (!%p437_p10)
}
  0x2e   : > { %330 = dma.hbm_to_vmem [thread:$0]  (!%p625_p7), %s146_s6, 128, %s149_s8, %s136_s19  }
  0x2f   : > { %157 = sbr.rel (%p588_p5) target bundleno = 302 (0x12e), region = 28 }
  0x34   : > { %490 = dma.done.wait (%p576_p1), [#allocation4], 128  }
  0x35   : > { %492 = vsyncadd (%p576_p1), [#allocation4], 4294967168  ;;  %s163_s25 = sand.u32 1, %s507_s10  }
  0x36   : > { %s304_s26 = sshll.u32 %s163_s25, 3  ;;  %s164_s27 = scalar_lea.sflag [#allocation7], %s163_s25 }
  0x37   : > { %s167_s28 = scalar_lea.vmem [#allocation6], %s304_s26 }
  0x38   : > { %494 = dma.done.wait (%p584_p4), %s164_s27, 128  }
  0x39   : > { %496 = vsyncadd (%p584_p4), %s164_s27, 4294967168  ;;  %p305_p11 = scmp.ne.s32.totalorder %s515_s12, 0 }
  0x3b   : > { %188 = sbr.rel (%p305_p11) target bundleno = 66 (0x42), region = 40 }
  0x40   : > { %v527_v0 = vmov 0.0  }
  0x41   : > { %189 = vst [vmem:[#allocation2] sm:$0xff] %v527_v0 }
  0x42 PF: > { %v191_v2 = vld [vmem:[%s167_s28] sm:$0xff]  ;;  %p306_p1 = scmp.ne.s32.totalorder %s515_s12, 3 }
  0x47   : > { %197 = sbr.rel (%p306_p1) target bundleno = 287 (0x11f), region = 44 }
  0x48   : > { %v190_v1 = vld [vmem:[#allocation2] sm:$0xff] }
  0x49   : > { %v192_v3 = vadd.f32 %v191_v2, %v190_v1 }
  0x4b   : > { %193 = vst [vmem:[#allocation2] sm:$0xff] %v192_v3 }
  0x4c   : > { %v199_v5 = vld [vmem:[#allocation3] sm:$0xff] }
  0x52   : > { %v198_v4 = vld [vmem:[#allocation2] sm:$0xff] }
  0x53   : > { %v200_v6 = vmul.f32 %v199_v5, %v198_v4 }
  0x55   : > { %201 = vadd.xlane.f32.xlu0 %v200_v6 }
  0xde   : > { %v202_v7 = vpop.xlane.xlu0 %201 }
  0xdf   : > { %v203_v8 = vrot.slane %v202_v7, 4 }
  0xe1   : > { %v204_v9 = vadd.f32 %v203_v8, %v202_v7 }
  0xe3   : > { %v205_v10 = vrot.slane %v204_v9, 2 }
  0xe5   : > { %v206_v11 = vadd.f32 %v205_v10, %v204_v9 }
  0xe7   : > { %v207_v12 = vrot.slane %v206_v11, 1 }
  0xe9   : > { %v208_v13 = vadd.f32 %v207_v12, %v206_v11 }
  0xeb   : > { %311 = vpush %v208_v13 }
 0x11c   : > { %s312_s16 = spop %311 }
 0x11d   : > { %v210_v14 = vstv %s312_s16 }
 0x11e   : > { %211 = vst [vmem:[#allocation8] sm:$0xff] %v210_v14 }
 0x11f PF: > { %p648_p4 = scmp.eq.s32.totalorder %s296_s15, 3  ;;  %s528_s17 = smov [#allocation8]  }
 0x120   : > { %s221_s18 = sshll.u32 %s528_s17, 4  ;;  %s222_s18 = int_to_ptr.vmem [resolvable:$true] %s221_s18 }
 0x121   : > { %s441_s29 = scalar_lea.vmem %s222_s18, 128  ;;  %p448_p8 = scmp.lt.s32.totalorder %s222_s18, %s222_s18 }
 0x122   : > { %p442_p5 = scmp.ne.s32.totalorder %s222_s18, %s441_s29  ;;  %p449_p13 = scmp.lt.s32.totalorder %s441_s29, %s441_s29 }
 0x124   : > { %p443_p12 = pnand %p442_p5, %p648_p4  ;;  %p450_p0 = por %p449_p13, %p448_p8 }
 0x126   : > { %p444_p7 = pneg %p443_p12 }
 0x128   : > { %p451_p2 = pnand %p450_p0, %p444_p7 }
 0x12a   : > { %454 = shalt.err (!%p451_p2)
}
 0x12b   : > { %320 = dma.vmem_to_hbm [thread:$0]  (%p648_p4), %s222_s18, 128, %s683_s2, [#allocation5]  }
 0x12c   : > { %498 = dma.done.wait (%p648_p4), [#allocation5], 128  }
 0x12d   : > { %500 = vsyncadd (%p648_p4), [#allocation5], 4294967168 }
 0x12e PF: > { %s17_s14 = sadd.s32 1, %s523_s14   ;;  %s690_s9 = smov %s507_s10 }
 0x12f   : > { %p14_p3 = scmp.ge.s32.totalorder %s17_s14, 6   ;;  %s691_s10 = smov %s511_s11 }
 0x130   : > { %s692_s11 = smov %s620_s30  ;;  %s693_s12 = smov %s519_s13 }
 0x131   : > { %s694_s13 = smov %s696_s22  ;;  %16 = sbr.rel (!%p14_p3) target bundleno = 6 (0x6), region = 79 }
 0x136   :  { %234 = vsyncpa [#allocation4], 1 }
 0x137   :  { %236 = vsyncpa [#allocation4 + $0x1], 1 }
 0x138   :  { %237 = vsyncpa [#allocation7], 1 }
 0x139   :  { %239 = vsyncpa [#allocation7 + $0x1], 1 }
 0x13a   :  { %240 = vsyncpa [#allocation5], 1 }
 0x13b   :  { %242 = vsyncpa [#allocation5 + $0x1], 1 }

</bundles_post_ra>
